<compile_context>
chip_gen: v7x
topology: tpu7x:2x2x1
jax: 0.10.0
libtpu: 0.0.40
codegen_flags: <defaults>
</compile_context>

<pallas_src>
import math

import jax
import jax.numpy as jnp
from jax.experimental import pallas as pl
from jax.experimental.pallas import tpu as pltpu


# ---------------------------------------------------------------------------
# Per-generation tuning.
# ---------------------------------------------------------------------------
_GEN_CONFIGS = {
    "v7": dict(block_bytes=6 * 1024 * 1024, vmem_limit=48 << 20,
               core_parallel=True, native_lowp_store=True),
    "v6": dict(block_bytes=4 * 1024 * 1024, vmem_limit=None,
               core_parallel=False, native_lowp_store=True),
    "v5e": dict(block_bytes=2 * 1024 * 1024, vmem_limit=None,
                core_parallel=False, native_lowp_store=False),
    "default": dict(block_bytes=2 * 1024 * 1024, vmem_limit=None,
                    core_parallel=False, native_lowp_store=False),
}


def _tpu_generation():
    try:
        kind = jax.devices()[0].device_kind.lower()
    except Exception:
        return "default"
    if "v7" in kind:
        return "v7"
    if "v6" in kind or "trillium" in kind:
        return "v6"
    if "v5" in kind and ("lite" in kind or "v5e" in kind):
        return "v5e"
    return "default"


# ---------------------------------------------------------------------------
# Kernels.
# ---------------------------------------------------------------------------
def _scalenorm_kernel(scale_ref, x_ref, o_ref, *, eps, native_store):
    # scale_ref: (1, 1) scalar in SMEM; x_ref / o_ref: (block_rows, H) in VMEM.
    x = x_ref[...]
    xf = x.astype(jnp.float32)
    # Sum of squares along the lane (last) axis, keepdim for broadcasting.
    sq = jnp.sum(xf * xf, axis=-1, keepdims=True)
    # max(sqrt(sq), eps) == sqrt(max(sq, eps^2)) (sqrt monotone) -> one rsqrt.
    eps_sq = jnp.float32(eps) * jnp.float32(eps)
    inv = jax.lax.rsqrt(jnp.maximum(sq, eps_sq))
    s = scale_ref[0, 0].astype(jnp.float32) * inv          # (block_rows, 1)
    if native_store:
        # bf16 store path (v6e/v7x): scale in native dtype, halves vreg traffic.
        o_ref[...] = x * s.astype(x.dtype)
    else:
        o_ref[...] = (xf * s).astype(o_ref.dtype)


def _sumsq_kernel(x_ref, ssq_ref, *, H, ht):
    # Pass 1 of the huge-H fallback: accumulate sum-of-squares over H tiles.
    # Output block index is constant across the (last, "arbitrary") j axis, so
    # ssq_ref stays resident in VMEM and acts as the accumulator.
    j = pl.program_id(1)

    @pl.when(j == 0)
    def _():
        ssq_ref[...] = jnp.zeros_like(ssq_ref)

    xf = x_ref[...].astype(jnp.float32)
    if H % ht != 0:
        # Ragged last H tile: zero out-of-bounds lanes so the cross-lane
        # reduction never sees padded garbage.
        col = jax.lax.broadcasted_iota(jnp.int32, xf.shape, xf.ndim - 1) + j * ht
        xf = jnp.where(col < H, xf, jnp.float32(0.0))
    ssq_ref[...] += jnp.sum(xf * xf, axis=-1, keepdims=True)


def _scale_from_sumsq_kernel(scale_ref, ssq_ref, x_ref, o_ref, *, eps,
                             native_store):
    # Pass 2 of the huge-H fallback: per-row scale from the precomputed sumsq.
    eps_sq = jnp.float32(eps) * jnp.float32(eps)
    inv = jax.lax.rsqrt(jnp.maximum(ssq_ref[...], eps_sq))
    s = scale_ref[0, 0].astype(jnp.float32) * inv
    x = x_ref[...]
    if native_store:
        o_ref[...] = x * s.astype(x.dtype)
    else:
        o_ref[...] = (x.astype(jnp.float32) * s).astype(o_ref.dtype)


# ---------------------------------------------------------------------------
# pallas_call wrappers.
# ---------------------------------------------------------------------------
def _run_full_h(x2, scale_arr, *, eps, R, H, br, cfg, itemsize, native_store):
    grid = (pl.cdiv(R, br),)
    kernel = lambda s, xr, orf: _scalenorm_kernel(
        s, xr, orf, eps=eps, native_store=native_store)
    ce = pl.CostEstimate(flops=int(3 * R * H), transcendentals=int(R),
                         bytes_accessed=int(2 * R * H * itemsize))

    def call(dim_sem):
        return pl.pallas_call(
            kernel,
            out_shape=jax.ShapeDtypeStruct((R, H), x2.dtype),
            grid_spec=pltpu.PrefetchScalarGridSpec(
                num_scalar_prefetch=0,
                grid=grid,
                in_specs=[
                    pl.BlockSpec(memory_space=pltpu.SMEM),     # scale scalar
                    pl.BlockSpec((br, H), lambda i: (i, 0)),   # x row block
                ],
                out_specs=pl.BlockSpec((br, H), lambda i: (i, 0)),
            ),
            compiler_params=pltpu.CompilerParams(
                dimension_semantics=dim_sem,
                vmem_limit_bytes=cfg["vmem_limit"]),
            cost_estimate=ce,
        )(scale_arr, x2)

    if cfg["core_parallel"] and grid[0] >= 2:
        # v7x: split the row grid across both TensorCores explicitly.
        try:
            return call((getattr(pltpu, "CORE_PARALLEL", "parallel"),))
        except Exception:
            pass  # fall back to plain "parallel" if CORE_PARALLEL is rejected
    return call(("parallel",))


def _run_tiled_h(x2, scale_arr, *, eps, R, H, row_mult, itemsize, tbb, cfg,
                 native_store):
    # H tile: multiple of 128 lanes; row tile: multiple of the sublane tile.
    ht = max(128, ((tbb // (row_mult * itemsize)) // 128) * 128)
    ht = min(ht, pl.cdiv(H, 128) * 128)
    br = max(row_mult, ((tbb // (ht * itemsize)) // row_mult) * row_mult)
    br = min(br, pl.cdiv(R, row_mult) * row_mult)
    if R <= row_mult:
        br = R
    grid = (pl.cdiv(R, br), pl.cdiv(H, ht))

    # Pass 1: per-row sum of squares.
    ssq = pl.pallas_call(
        lambda xr, sr: _sumsq_kernel(xr, sr, H=H, ht=ht),
        out_shape=jax.ShapeDtypeStruct((R, 1), jnp.float32),
        grid_spec=pltpu.PrefetchScalarGridSpec(
            num_scalar_prefetch=0,
            grid=grid,
            in_specs=[pl.BlockSpec((br, ht), lambda i, j: (i, j))],
            out_specs=pl.BlockSpec((br, 1), lambda i, j: (i, 0)),
        ),
        compiler_params=pltpu.CompilerParams(
            dimension_semantics=("parallel", "arbitrary"),
            vmem_limit_bytes=cfg["vmem_limit"]),
        cost_estimate=pl.CostEstimate(
            flops=int(2 * R * H), transcendentals=0,
            bytes_accessed=int(R * H * itemsize + R * 4)),
    )(x2)

    # Pass 2: scale each H tile using the precomputed per-row sumsq.
    out = pl.pallas_call(
        lambda s, q, xr, orf: _scale_from_sumsq_kernel(
            s, q, xr, orf, eps=eps, native_store=native_store),
        out_shape=jax.ShapeDtypeStruct((R, H), x2.dtype),
        grid_spec=pltpu.PrefetchScalarGridSpec(
            num_scalar_prefetch=0,
            grid=grid,
            in_specs=[
                pl.BlockSpec(memory_space=pltpu.SMEM),          # scale scalar
                pl.BlockSpec((br, 1), lambda i, j: (i, 0)),     # per-row sumsq
                pl.BlockSpec((br, ht), lambda i, j: (i, j)),    # x tile
            ],
            out_specs=pl.BlockSpec((br, ht), lambda i, j: (i, j)),
        ),
        compiler_params=pltpu.CompilerParams(
            dimension_semantics=("parallel", "parallel"),
            vmem_limit_bytes=cfg["vmem_limit"]),
        cost_estimate=pl.CostEstimate(
            flops=int(R * H), transcendentals=int(R),
            bytes_accessed=int(2 * R * H * itemsize + 2 * R * 4)),
    )(scale_arr, ssq, x2)
    return out


def scale_norm(x, scale_param, eps=1e-5, block_rows=None,
               target_block_bytes=None):
    """Apply ScaleNorm along the last axis of `x`.

    x:            array of shape (..., H)
    scale_param:  scalar learned parameter (already = sqrt(scale_init))
    """
    orig_shape = x.shape
    H = int(orig_shape[-1])
    R = int(math.prod(orig_shape[:-1])) if len(orig_shape) > 1 else 1
    x2 = x.reshape(R, H)

    gen = _tpu_generation()
    cfg = _GEN_CONFIGS.get(gen, _GEN_CONFIGS["default"])
    tbb = (int(target_block_bytes) if target_block_bytes is not None
           else cfg["block_bytes"])

    itemsize = jnp.dtype(x.dtype).itemsize
    # Native sublane tile: 8 rows for 4-byte dtypes, 16 for bf16, 32 for int8.
    row_mult = 8 if itemsize >= 4 else (16 if itemsize == 2 else 32)
    native_store = bool(cfg["native_lowp_store"] and itemsize == 2
                        and jnp.dtype(x.dtype) != jnp.float32)

    scale_arr = jnp.asarray(scale_param, dtype=jnp.float32).reshape(1, 1)

    if row_mult * H * itemsize > tbb and H > 128:
        # Huge hidden size: a full-H row block would exceed the block budget
        # (and could exceed scoped VMEM, especially on v7x's 64 MiB). Fall back
        # to the two-pass H-tiled pipeline.
        out = _run_tiled_h(x2, scale_arr, eps=eps, R=R, H=H, row_mult=row_mult,
                           itemsize=itemsize, tbb=tbb, cfg=cfg,
                           native_store=native_store)
    else:
        if R <= row_mult:
            # Block row-dim equal to the full array dim is always legal.
            br = R
        else:
            br = max(row_mult, ((tbb // (itemsize * H)) // row_mult) * row_mult)
            br = min(br, pl.cdiv(R, row_mult) * row_mult)
            if block_rows is not None:
                br = max(row_mult, (int(block_rows) // row_mult) * row_mult)
                br = min(br, pl.cdiv(R, row_mult) * row_mult)
        out = _run_full_h(x2, scale_arr, eps=eps, R=R, H=H, br=br, cfg=cfg,
                          itemsize=itemsize, native_store=native_store)

    return out.reshape(orig_shape)


def scale_norm_reference(x, scale_param, eps=1e-5):
    xf = x.astype(jnp.float32)
    nrm = jnp.sqrt(jnp.sum(xf * xf, axis=-1, keepdims=True))
    nrm = jnp.maximum(nrm, jnp.float32(eps))
    return (xf * (jnp.float32(scale_param) / nrm)).astype(x.dtype)


if __name__ == "__main__":
    key = jax.random.PRNGKey(0)
    # Module __init__: ScaleNorm(scale) -> param = sqrt(scale)
    scale_init = 0.35
    scale_param = jnp.float32(math.sqrt(scale_init))
    eps = 1e-5

    # Small shape consistent with the module: (batch=2, seq=8, hidden=32)
    x = jax.random.normal(key, (2, 8, 32), dtype=jnp.float32)
    out = jax.block_until_ready(scale_norm(x, scale_param, eps=eps))
    ref = scale_norm_reference(x, scale_param, eps=eps)
    assert out.shape == x.shape
    assert jnp.allclose(out, ref, atol=1e-5, rtol=1e-5), "mismatch (base)"

    # Ragged last row block.
    x2 = jax.random.normal(jax.random.PRNGKey(1), (3, 7, 32), dtype=jnp.float32)
    out2 = jax.block_until_ready(scale_norm(x2, scale_param, eps=eps))
    assert jnp.allclose(out2, scale_norm_reference(x2, scale_param, eps=eps),
                        atol=1e-5, rtol=1e-5), "mismatch (ragged rows)"

    # PyTorch docstring example (2x2).
    x3 = jnp.array([[1.269, 39.36], [0.00918, -9.12]], dtype=jnp.float32)
    out3 = jax.block_until_ready(scale_norm(x3, scale_param, eps=eps))
    assert jnp.allclose(out3, scale_norm_reference(x3, scale_param, eps=eps),
                        atol=1e-5, rtol=1e-5), "mismatch (docstring example)"

    # bf16 input (native-dtype store path on v6e/v7x, f32 path elsewhere).
    xb = jax.random.normal(jax.random.PRNGKey(2), (2, 8, 32),
                           dtype=jnp.float32).astype(jnp.bfloat16)
    outb = jax.block_until_ready(scale_norm(xb, scale_param, eps=eps))
    refb = scale_norm_reference(xb, scale_param, eps=eps)
    assert jnp.allclose(outb.astype(jnp.float32), refb.astype(jnp.float32),
                        atol=5e-2, rtol=5e-2), "mismatch (bf16)"

    # Force the two-pass H-tiled fallback (tiny block budget): even H tiles...
    x4 = jax.random.normal(jax.random.PRNGKey(3), (16, 256), dtype=jnp.float32)
    out4 = jax.block_until_ready(
        scale_norm(x4, scale_param, eps=eps, target_block_bytes=4096))
    assert jnp.allclose(out4, scale_norm_reference(x4, scale_param, eps=eps),
                        atol=1e-4, rtol=1e-4), "mismatch (H-tiled)"

    # ...and a ragged last H tile (masked lanes in the sumsq pass).
    x5 = jax.random.normal(jax.random.PRNGKey(4), (16, 200), dtype=jnp.float32)
    out5 = jax.block_until_ready(
        scale_norm(x5, scale_param, eps=eps, target_block_bytes=4096))
    assert jnp.allclose(out5, scale_norm_reference(x5, scale_param, eps=eps),
                        atol=1e-4, rtol=1e-4), "mismatch (H-tiled ragged)"

    print("KERNEL_OK")
</pallas_src>

<mosaic_0001>
module attributes {stable_mosaic.version = 11 : i64} {
  func.func @_lambda_(%arg0: i32, %arg1: memref<1x1xf32, #tpu.memory_space<smem>>, %arg2: memref<16x32xf32, #tpu.memory_space<vmem>>, %arg3: memref<16x32xf32, #tpu.memory_space<vmem>>) attributes {dimension_semantics = [#tpu.dimension_semantics<parallel>], iteration_bounds = array<i64: 1>, scalar_prefetch = 0 : i64, scratch_operands = 0 : i64, tpu.core_type = #tpu.core_type<tc>, window_params = [{transform_indices = @transform_0, window_bounds = array<i64: 1, 1>}, {transform_indices = @transform_1, window_bounds = array<i64: 16, 32>}, {transform_indices = @transform_2, window_bounds = array<i64: 16, 32>}]} {
    %c0 = arith.constant 0 : index
    %c0_0 = arith.constant 0 : index
    %0 = vector.load %arg2[%c0, %c0_0] : memref<16x32xf32, #tpu.memory_space<vmem>>, vector<16x32xf32>
    %1 = arith.mulf %0, %0 : vector<16x32xf32>
    %cst = arith.constant dense<0.000000e+00> : vector<16xf32>
    %2 = vector.multi_reduction <add>, %1, %cst [1] : vector<16x32xf32> to vector<16xf32>
    %3 = vector.shape_cast %2 : vector<16xf32> to vector<16x1xf32>
    %cst_1 = arith.constant 9.99999974E-6 : f32
    %cst_2 = arith.constant 9.99999974E-6 : f32
    %4 = arith.mulf %cst_1, %cst_2 : f32
    %5 = vector.broadcast %4 : f32 to vector<16x1xf32>
    %6 = arith.maximumf %3, %5 : vector<16x1xf32>
    %7 = math.rsqrt %6 : vector<16x1xf32>
    %c0_3 = arith.constant 0 : index
    %c0_4 = arith.constant 0 : index
    %8 = memref.load %arg1[%c0_3, %c0_4] : memref<1x1xf32, #tpu.memory_space<smem>>
    %9 = vector.broadcast %8 : f32 to vector<16x1xf32>
    %10 = arith.mulf %9, %7 : vector<16x1xf32>
    %11 = vector.broadcast %10 : vector<16x1xf32> to vector<16x32xf32>
    %12 = arith.mulf %0, %11 : vector<16x32xf32>
    %c0_5 = arith.constant 0 : index
    %c0_6 = arith.constant 0 : index
    %13 = vector.load %arg3[%c0_5, %c0_6] : memref<16x32xf32, #tpu.memory_space<vmem>>, vector<16x32xf32>
    tpu.vector_store %arg3[%c0_5, %c0_6], %12 {strides = array<i32>} : memref<16x32xf32, #tpu.memory_space<vmem>>, vector<16x32xf32>,
    return
  }
  func.func @transform_0(%arg0: i32) -> (i32, i32) {
    %c0_i32 = arith.constant 0 : i32
    %c0_i32_0 = arith.constant 0 : i32
    %c0_i32_1 = arith.constant 0 : i32
    return %c0_i32, %c0_i32_0 : i32, i32
  }
  func.func @transform_1(%arg0: i32) -> (i32, i32) {
    %c0_i32 = arith.constant 0 : i32
    %c0_i32_0 = arith.constant 0 : i32
    return %arg0, %c0_i32 : i32, i32
  }
  func.func @transform_2(%arg0: i32) -> (i32, i32) {
    %c0_i32 = arith.constant 0 : i32
    %c0_i32_0 = arith.constant 0 : i32
    return %arg0, %c0_i32 : i32, i32
  }
}

</mosaic_0001>

<bundles_post_ra>
// kernel: tpu_custom_call.1
= control target key start
LH: loop header
LB: loop body
LE: loop exit
PB: predicated region body
PF: predicated region fallthrough
CT: control target
= control target key end

     0   :  { %8 = vsyncpa [#allocation4], 0  ;;  %s179_s0 = inlined_call_operand.<no memory space> [shape: f32[1,1], index: 0, kind: input, shape index: {}]   ;;  %s180_s1 = inlined_call_operand.hbm [shape: f32[16,32], index: 1, kind: input, shape index: {}]   ;;  %s181_s2 = inlined_call_operand.hbm [shape: f32[16,32], index: 2, kind: output, shape index: {}]  }
   0x1   :  { %9 = vsyncpa [#allocation5], 0  ;;  %s123_s9 = smov [#allocation3]   ;;  %s75_s13 = scalar_lea.hbm %s180_s1, 256 }
   0x2   :  { %s17_s10 = sshll.u32 %s123_s9, 4  ;;  %p76_p0 = scmp.ne.s32.totalorder %s180_s1, %s75_s13  ;;  %s18_s10 = int_to_ptr.vmem [resolvable:$true] %s17_s10 }
   0x3   :  { %p79_p1 = scmp.lt.u32.totalorder %s75_s13, %s180_s1 }
   0x5   :  { %p81_p2 = pnand %p79_p1, %p76_p0 }
   0x7   :  { %84 = shalt.err (!%p81_p2)
}
   0x8   :  { %s85_s18 = scalar_lea.vmem %s18_s10, 256  ;;  %p90_p4 = scmp.lt.s32.totalorder %s18_s10, %s18_s10 }
   0x9   :  { %p86_p3 = scmp.ne.s32.totalorder %s18_s10, %s85_s18  ;;  %p91_p5 = scmp.lt.s32.totalorder %s85_s18, %s85_s18 }
   0xb   :  { %p92_p6 = por %p91_p5, %p90_p4 }
   0xd   :  { %p93_p7 = pnand %p92_p6, %p86_p3 }
   0xf   :  { %96 = shalt.err (!%p93_p7)
}
  0x10   :  { %s124_s19 = smov 128   ;;  %s125_s20 = smov 8  }
  0x11   :  { %23 = dma.hbm_to_vmem [thread:$0]  %s180_s1, 256, %s18_s10, [#allocation4], %s124_s19, %s124_s19, %s125_s20  }
  0x12   :  { %119 = dma.done.wait [#allocation4], 256  }
  0x13   :  { %120 = vsyncadd [#allocation4], 4294967040  ;;  %v27_v0 = vld [vmem:[#allocation3] sm:$0xff]  ;;  %vm31_vm0 = vcmask 261120   ;;  %v28_v1 = vld [vmem:[#allocation3 + $0x8] sm:$0xff]  ;;  %v43_v10 = vstv %s179_s0  ;;  %s126_s24 = smov [#allocation6]  }
  0x14   :  { %v29_v2 = vmul.f32 %v27_v0, %v27_v0  ;;  %v30_v3 = vmul.f32 %v28_v1, %v28_v1  ;;  %s55_s25 = sshll.u32 %s126_s24, 4  ;;  %s56_s25 = int_to_ptr.vmem [resolvable:$true] %s55_s25 }
  0x15   :  { %s97_s26 = scalar_lea.vmem %s56_s25, 256  ;;  %p102_p9 = scmp.lt.s32.totalorder %s56_s25, %s56_s25 }
  0x16   :  { %v32_v4 = vsel %vm31_vm0, %v29_v2, 0.0  ;;  %v35_v5 = vsel %vm31_vm0, %v30_v3, 0.0  ;;  %p98_p8 = scmp.ne.s32.totalorder %s56_s25, %s97_s26  ;;  %p103_p10 = scmp.lt.s32.totalorder %s97_s26, %s97_s26 }
  0x17   :  { %33 = vadd.xlane.f32.xlu0 %v32_v4 }
  0x18   :  { %p104_p11 = por %p103_p10, %p102_p9 }
  0x1a   :  { %p105_p12 = pnand %p104_p11, %p98_p8 }
  0x1b   :  { %36 = vadd.xlane.f32.xlu0 %v35_v5 }
  0xa4   :  { %v34_v6 = vpop.xlane.xlu0 %33 }
  0xa5   :  { %v38_v7 = vmax.f32 %v34_v6, 9.9999994e-11 }
  0xa7   :  { %71 = vrsqrt.f32 %v38_v7 }
  0xa8   :  { %v37_v8 = vpop.xlane.xlu0 %36 }
  0xa9   :  { %v39_v9 = vmax.f32 %v37_v8, 9.9999994e-11 }
  0xab   :  { %73 = vrsqrt.f32 %v39_v9 }
  0xb1   :  { %v72_v11 = vpop.eup %71 }
  0xb2   :  { %v44_v12 = vmul.f32 %v72_v11, %v43_v10 }
  0xb4   :  { %v46_v13 = vmul.f32 %v44_v12, %v27_v0 }
  0xb5   :  { %v74_v14 = vpop.eup %73 }
  0xb6   :  { %v45_v15 = vmul.f32 %v74_v14, %v43_v10  ;;  %48 = vst.msk [vmem:[#allocation6] sm:$0xff] %vm31_vm0, %v46_v13 }
  0xb8   :  { %v47_v16 = vmul.f32 %v45_v15, %v28_v1 }
  0xba   :  { %49 = vst.msk [vmem:[#allocation6 + $0x8] sm:$0xff] %vm31_vm0, %v47_v16 }
  0xbb   :  { %108 = shalt.err (!%p105_p12)
}
  0xbc   :  { %s109_s28 = scalar_lea.hbm %s181_s2, 256 }
  0xbd   :  { %p110_p13 = scmp.ne.s32.totalorder %s181_s2, %s109_s28  ;;  %p113_p0 = scmp.lt.u32.totalorder %s109_s28, %s181_s2 }
  0xbf   :  { %p115_p1 = pnand %p113_p0, %p110_p13 }
  0xc1   :  { %118 = shalt.err (!%p115_p1)
}
  0xc2   :  { %61 = dma.vmem_to_hbm [thread:$0]  %s56_s25, 256, %s181_s2, [#allocation5], %s124_s19, %s124_s19, %s125_s20  }
  0xc3   :  { %121 = dma.done.wait [#allocation5], 256  }
  0xc4   :  { %122 = vsyncadd [#allocation5], 4294967040 }
  0xc5   :  { %65 = vsyncpa [#allocation4], 1 }
  0xc6   :  { %66 = vsyncpa [#allocation5], 1 }

</bundles_post_ra>
